<compile_context>
chip_gen: v5e
topology: v5e:2x2
jax: 0.10.0
libtpu: 0.0.40
codegen_flags: <defaults>
</compile_context>

<pallas_src>
import math

import jax
import jax.numpy as jnp
import numpy as np
from jax.experimental import pallas as pl
from jax.experimental.pallas import tpu as pltpu


def _round_up(x, m):
    return ((x + m - 1) // m) * m


# ----------------------------------------------------------------------------
# Fused kernel: Q/K projection + per-head modal attention + modal softmax
# ----------------------------------------------------------------------------
def fused_modal_attention_kernel(x_ref, w_ref, b_ref, sel_ref, out_ref):
    """x_ref:   [M, T, E]  bf16  modality-major activations, T=(b,s) rows in tile
       w_ref:   [E, 2E]    bf16  [Wq | Wk]                      (VMEM resident)
       b_ref:   [1, 2E]    f32   [bq | bk]                      (VMEM resident)
       sel_ref: [E, H]     f32   block-diag head selector * 1/sqrt(Dh)
       out_ref: [T, M]     f32   modal weights (softmax over M)"""
    M, T, E = x_ref.shape
    H = sel_ref.shape[1]

    w = w_ref[...]
    b = b_ref[...]
    sel = sel_ref[...]

    # --- fused Q/K projection: one MXU matmul per modality -------------------
    qs, ks = [], []
    for m in range(M):
        qk = jnp.dot(x_ref[m], w, preferred_element_type=jnp.float32) + b  # [T, 2E]
        qs.append(qk[:, :E])
        ks.append(qk[:, E:])

    # --- per-head scores for every (query-mod i, key-mod j) pair -------------
    # s[i][j][t, h] = (1/sqrt(Dh)) * sum_{d in head h} Q_i[t, d] * K_j[t, d]
    # (elementwise VPU product over the full tile + tiny selector matmul)
    s = [[jnp.dot(qs[i] * ks[j], sel, preferred_element_type=jnp.float32)
          for j in range(M)] for i in range(M)]

    # --- per-head softmax over key modality j; accumulate sum over (i, h) ----
    acc = [jnp.zeros((T, 1), jnp.float32) for _ in range(M)]
    for i in range(M):
        mx = s[i][0]
        for j in range(1, M):
            mx = jnp.maximum(mx, s[i][j])
        e = [jnp.exp(s[i][j] - mx) for j in range(M)]
        denom = e[0]
        for j in range(1, M):
            denom = denom + e[j]
        inv = pl.reciprocal(denom, approx=True)                    # EUP slot
        for j in range(M):
            acc[j] = acc[j] + jnp.sum(e[j] * inv, axis=-1, keepdims=True)

    # --- mean over heads, final softmax over modalities ----------------------
    lane = jax.lax.broadcasted_iota(jnp.int32, (T, M), 1)
    mw = jnp.zeros((T, M), jnp.float32)
    for j in range(M):
        mw = jnp.where(lane == j, acc[j], mw)                      # pack [T, M]
    mw = mw * (1.0 / H)
    mw = mw - jnp.max(mw, axis=-1, keepdims=True)
    ew = jnp.exp(mw)
    out_ref[...] = ew / jnp.sum(ew, axis=-1, keepdims=True)


# ----------------------------------------------------------------------------
# Wrapper
# ----------------------------------------------------------------------------
def modal_attention(modal_reps, wq, bq, wk, bk, wv, bv, num_heads, tile_bs=512):
    del wv, bv  # V projection is never consumed by the forward pass.
    B, S, E = modal_reps[0].shape
    M = len(modal_reps)
    H = num_heads
    Dh = E // H
    assert Dh * H == E, "embed_dim must be divisible by num_heads"

    BS = B * S
    TILE_BS = min(tile_bs, _round_up(BS, 8))
    BS_pad = _round_up(BS, TILE_BS)

    # Modality-major layout [M, BS, E] so the kernel indexes modalities on the
    # (free) leading dim and keeps E on the lane axis of the DMA'd block.
    x = jnp.stack(modal_reps, axis=0).reshape(M, BS, E)
    if BS_pad != BS:
        x = jnp.pad(x, ((0, 0), (0, BS_pad - BS), (0, 0)))
    x = x.astype(jnp.bfloat16)

    w_qk = jnp.concatenate([wq, wk], axis=1).astype(jnp.bfloat16)        # [E, 2E]
    b_qk = jnp.concatenate([bq, bk]).reshape(1, 2 * E).astype(jnp.float32)

    # Block-diagonal head selector with the 1/sqrt(Dh) score scale folded in.
    head_of_col = jnp.repeat(jnp.arange(H), Dh)                           # [E]
    sel = (head_of_col[:, None] == jnp.arange(H)[None, :]).astype(jnp.float32)
    sel = sel / math.sqrt(Dh)                                             # [E, H]

    grid = (BS_pad // TILE_BS,)
    out = pl.pallas_call(
        fused_modal_attention_kernel,
        out_shape=jax.ShapeDtypeStruct((BS_pad, M), jnp.float32),
        grid=grid,
        in_specs=[
            pl.BlockSpec((M, TILE_BS, E), lambda g: (0, g, 0)),
            pl.BlockSpec((E, 2 * E), lambda g: (0, 0)),   # resident weights
            pl.BlockSpec((1, 2 * E), lambda g: (0, 0)),   # resident bias
            pl.BlockSpec((E, H), lambda g: (0, 0)),       # resident selector
        ],
        out_specs=pl.BlockSpec((TILE_BS, M), lambda g: (g, 0)),
        compiler_params=pltpu.CompilerParams(
            dimension_semantics=("parallel",)),
    )(x, w_qk, b_qk, sel)

    return out[:BS].reshape(B, S, M)


# ----------------------------------------------------------------------------
# Pure-JAX reference (mirrors the torch forward, dropout = identity, f32)
# ----------------------------------------------------------------------------
def modal_attention_ref(modal_reps, wq, bq, wk, bk, wv, bv, num_heads):
    B, S, E = modal_reps[0].shape
    M = len(modal_reps)
    H = num_heads
    Dh = E // H
    stacked = jnp.stack(modal_reps, axis=2)                      # [B,S,M,E]
    Q = (stacked @ wq + bq).reshape(B, S, M, H, Dh).transpose(0, 1, 3, 2, 4)
    K = (stacked @ wk + bk).reshape(B, S, M, H, Dh).transpose(0, 1, 3, 2, 4)
    scores = jnp.einsum("bshid,bshjd->bshij", Q, K) / math.sqrt(Dh)
    attn = jax.nn.softmax(scores, axis=-1)
    mw = attn.mean(axis=2).sum(axis=-2)
    return jax.nn.softmax(mw, axis=-1)


if __name__ == "__main__":
    # Small shapes consistent with the module: embed_dim divisible by num_heads.
    B, S, E = 2, 8, 40
    num_heads = 5
    num_modalities = 3

    key = jax.random.PRNGKey(0)
    keys = jax.random.split(key, 9)

    # Deterministic nn.Linear-style init: U(-1/sqrt(E), 1/sqrt(E)).
    bound = 1.0 / math.sqrt(E)
    wq = jax.random.uniform(keys[0], (E, E), jnp.float32, -bound, bound)
    bq = jax.random.uniform(keys[1], (E,), jnp.float32, -bound, bound)
    wk = jax.random.uniform(keys[2], (E, E), jnp.float32, -bound, bound)
    bk = jax.random.uniform(keys[3], (E,), jnp.float32, -bound, bound)
    wv = jax.random.uniform(keys[4], (E, E), jnp.float32, -bound, bound)
    bv = jax.random.uniform(keys[5], (E,), jnp.float32, -bound, bound)

    modal_reps = [
        jax.random.normal(keys[6 + m], (B, S, E), jnp.float32)
        for m in range(num_modalities)
    ]

    ref = modal_attention_ref(modal_reps, wq, bq, wk, bk, wv, bv, num_heads)

    # Single-tile path (BS=16 -> one grid step).
    out = modal_attention(modal_reps, wq, bq, wk, bk, wv, bv, num_heads)
    out = jax.block_until_ready(out)
    assert out.shape == (B, S, num_modalities)
    # Tolerance loosened for bf16 MXU operands + approx reciprocal.
    np.testing.assert_allclose(np.asarray(out), np.asarray(ref),
                               rtol=2e-2, atol=2e-3)

    # Multi-tile path (forces grid > 1 with the same shapes).
    out2 = modal_attention(modal_reps, wq, bq, wk, bk, wv, bv, num_heads,
                           tile_bs=8)
    out2 = jax.block_until_ready(out2)
    np.testing.assert_allclose(np.asarray(out2), np.asarray(ref),
                               rtol=2e-2, atol=2e-3)

    print("KERNEL_OK")
</pallas_src>

<mosaic_0001>
module attributes {stable_mosaic.version = 11 : i64} {
  func.func @fused_modal_attention_kernel(%arg0: i32, %arg1: memref<3x16x40xbf16, #tpu.memory_space<vmem>>, %arg2: memref<40x80xbf16, #tpu.memory_space<vmem>>, %arg3: memref<1x80xf32, #tpu.memory_space<vmem>>, %arg4: memref<40x5xf32, #tpu.memory_space<vmem>>, %arg5: memref<16x3xf32, #tpu.memory_space<vmem>>) attributes {dimension_semantics = [#tpu.dimension_semantics<parallel>], iteration_bounds = array<i64: 1>, scalar_prefetch = 0 : i64, scratch_operands = 0 : i64, tpu.core_type = #tpu.core_type<tc>, window_params = [{transform_indices = @transform_0, window_bounds = array<i64: 3, 16, 40>}, {pipeline_mode = #tpu.pipeline_mode<synchronous>, transform_indices = @transform_1, window_bounds = array<i64: 40, 80>}, {pipeline_mode = #tpu.pipeline_mode<synchronous>, transform_indices = @transform_2, window_bounds = array<i64: 1, 80>}, {pipeline_mode = #tpu.pipeline_mode<synchronous>, transform_indices = @transform_3, window_bounds = array<i64: 40, 5>}, {transform_indices = @transform_4, window_bounds = array<i64: 16, 3>}]} {
    %c0 = arith.constant 0 : index
    %c0_0 = arith.constant 0 : index
    %0 = vector.load %arg2[%c0, %c0_0] : memref<40x80xbf16, #tpu.memory_space<vmem>>, vector<40x80xbf16>
    %c0_1 = arith.constant 0 : index
    %c0_2 = arith.constant 0 : index
    %1 = vector.load %arg3[%c0_1, %c0_2] : memref<1x80xf32, #tpu.memory_space<vmem>>, vector<1x80xf32>
    %c0_3 = arith.constant 0 : index
    %c0_4 = arith.constant 0 : index
    %2 = vector.load %arg4[%c0_3, %c0_4] : memref<40x5xf32, #tpu.memory_space<vmem>>, vector<40x5xf32>
    %c0_5 = arith.constant 0 : index
    %c0_6 = arith.constant 0 : index
    %c0_7 = arith.constant 0 : index
    %3 = vector.load %arg1[%c0_5, %c0_6, %c0_7] : memref<3x16x40xbf16, #tpu.memory_space<vmem>>, vector<1x16x40xbf16>
    %4 = vector.shape_cast %3 : vector<1x16x40xbf16> to vector<16x40xbf16>
    %cst = arith.constant dense<0.000000e+00> : vector<16x80xf32>
    %5 = tpu.matmul %4, %0, %cst {dimension_numbers = #tpu.dot_dimension_numbers<[1], [0], [0], [1], [0, 0, 1, 1], [], []>} : vector<16x40xbf16>, vector<40x80xbf16>, vector<16x80xf32> -> vector<16x80xf32>
    %6 = vector.broadcast %1 : vector<1x80xf32> to vector<16x80xf32>
    %7 = arith.addf %5, %6 : vector<16x80xf32>
    %8 = vector.extract_strided_slice %7 {offsets = [0, 0], sizes = [16, 40], strides = [1, 1]} : vector<16x80xf32> to vector<16x40xf32>
    %9 = vector.extract_strided_slice %7 {offsets = [0, 40], sizes = [16, 40], strides = [1, 1]} : vector<16x80xf32> to vector<16x40xf32>
    %c1 = arith.constant 1 : index
    %c0_8 = arith.constant 0 : index
    %c0_9 = arith.constant 0 : index
    %10 = vector.load %arg1[%c1, %c0_8, %c0_9] : memref<3x16x40xbf16, #tpu.memory_space<vmem>>, vector<1x16x40xbf16>
    %11 = vector.shape_cast %10 : vector<1x16x40xbf16> to vector<16x40xbf16>
    %cst_10 = arith.constant dense<0.000000e+00> : vector<16x80xf32>
    %12 = tpu.matmul %11, %0, %cst_10 {dimension_numbers = #tpu.dot_dimension_numbers<[1], [0], [0], [1], [0, 0, 1, 1], [], []>} : vector<16x40xbf16>, vector<40x80xbf16>, vector<16x80xf32> -> vector<16x80xf32>
    %13 = vector.broadcast %1 : vector<1x80xf32> to vector<16x80xf32>
    %14 = arith.addf %12, %13 : vector<16x80xf32>
    %15 = vector.extract_strided_slice %14 {offsets = [0, 0], sizes = [16, 40], strides = [1, 1]} : vector<16x80xf32> to vector<16x40xf32>
    %16 = vector.extract_strided_slice %14 {offsets = [0, 40], sizes = [16, 40], strides = [1, 1]} : vector<16x80xf32> to vector<16x40xf32>
    %c2 = arith.constant 2 : index
    %c0_11 = arith.constant 0 : index
    %c0_12 = arith.constant 0 : index
    %17 = vector.load %arg1[%c2, %c0_11, %c0_12] : memref<3x16x40xbf16, #tpu.memory_space<vmem>>, vector<1x16x40xbf16>
    %18 = vector.shape_cast %17 : vector<1x16x40xbf16> to vector<16x40xbf16>
    %cst_13 = arith.constant dense<0.000000e+00> : vector<16x80xf32>
    %19 = tpu.matmul %18, %0, %cst_13 {dimension_numbers = #tpu.dot_dimension_numbers<[1], [0], [0], [1], [0, 0, 1, 1], [], []>} : vector<16x40xbf16>, vector<40x80xbf16>, vector<16x80xf32> -> vector<16x80xf32>
    %20 = vector.broadcast %1 : vector<1x80xf32> to vector<16x80xf32>
    %21 = arith.addf %19, %20 : vector<16x80xf32>
    %22 = vector.extract_strided_slice %21 {offsets = [0, 0], sizes = [16, 40], strides = [1, 1]} : vector<16x80xf32> to vector<16x40xf32>
    %23 = vector.extract_strided_slice %21 {offsets = [0, 40], sizes = [16, 40], strides = [1, 1]} : vector<16x80xf32> to vector<16x40xf32>
    %24 = arith.mulf %8, %9 : vector<16x40xf32>
    %cst_14 = arith.constant dense<0.000000e+00> : vector<16x5xf32>
    %25 = tpu.matmul %24, %2, %cst_14 {dimension_numbers = #tpu.dot_dimension_numbers<[1], [0], [0], [1], [0, 0, 1, 1], [], []>} : vector<16x40xf32>, vector<40x5xf32>, vector<16x5xf32> -> vector<16x5xf32>
    %26 = arith.mulf %8, %16 : vector<16x40xf32>
    %cst_15 = arith.constant dense<0.000000e+00> : vector<16x5xf32>
    %27 = tpu.matmul %26, %2, %cst_15 {dimension_numbers = #tpu.dot_dimension_numbers<[1], [0], [0], [1], [0, 0, 1, 1], [], []>} : vector<16x40xf32>, vector<40x5xf32>, vector<16x5xf32> -> vector<16x5xf32>
    %28 = arith.mulf %8, %23 : vector<16x40xf32>
    %cst_16 = arith.constant dense<0.000000e+00> : vector<16x5xf32>
    %29 = tpu.matmul %28, %2, %cst_16 {dimension_numbers = #tpu.dot_dimension_numbers<[1], [0], [0], [1], [0, 0, 1, 1], [], []>} : vector<16x40xf32>, vector<40x5xf32>, vector<16x5xf32> -> vector<16x5xf32>
    %30 = arith.mulf %15, %9 : vector<16x40xf32>
    %cst_17 = arith.constant dense<0.000000e+00> : vector<16x5xf32>
    %31 = tpu.matmul %30, %2, %cst_17 {dimension_numbers = #tpu.dot_dimension_numbers<[1], [0], [0], [1], [0, 0, 1, 1], [], []>} : vector<16x40xf32>, vector<40x5xf32>, vector<16x5xf32> -> vector<16x5xf32>
    %32 = arith.mulf %15, %16 : vector<16x40xf32>
    %cst_18 = arith.constant dense<0.000000e+00> : vector<16x5xf32>
    %33 = tpu.matmul %32, %2, %cst_18 {dimension_numbers = #tpu.dot_dimension_numbers<[1], [0], [0], [1], [0, 0, 1, 1], [], []>} : vector<16x40xf32>, vector<40x5xf32>, vector<16x5xf32> -> vector<16x5xf32>
    %34 = arith.mulf %15, %23 : vector<16x40xf32>
    %cst_19 = arith.constant dense<0.000000e+00> : vector<16x5xf32>
    %35 = tpu.matmul %34, %2, %cst_19 {dimension_numbers = #tpu.dot_dimension_numbers<[1], [0], [0], [1], [0, 0, 1, 1], [], []>} : vector<16x40xf32>, vector<40x5xf32>, vector<16x5xf32> -> vector<16x5xf32>
    %36 = arith.mulf %22, %9 : vector<16x40xf32>
    %cst_20 = arith.constant dense<0.000000e+00> : vector<16x5xf32>
    %37 = tpu.matmul %36, %2, %cst_20 {dimension_numbers = #tpu.dot_dimension_numbers<[1], [0], [0], [1], [0, 0, 1, 1], [], []>} : vector<16x40xf32>, vector<40x5xf32>, vector<16x5xf32> -> vector<16x5xf32>
    %38 = arith.mulf %22, %16 : vector<16x40xf32>
    %cst_21 = arith.constant dense<0.000000e+00> : vector<16x5xf32>
    %39 = tpu.matmul %38, %2, %cst_21 {dimension_numbers = #tpu.dot_dimension_numbers<[1], [0], [0], [1], [0, 0, 1, 1], [], []>} : vector<16x40xf32>, vector<40x5xf32>, vector<16x5xf32> -> vector<16x5xf32>
    %40 = arith.mulf %22, %23 : vector<16x40xf32>
    %cst_22 = arith.constant dense<0.000000e+00> : vector<16x5xf32>
    %41 = tpu.matmul %40, %2, %cst_22 {dimension_numbers = #tpu.dot_dimension_numbers<[1], [0], [0], [1], [0, 0, 1, 1], [], []>} : vector<16x40xf32>, vector<40x5xf32>, vector<16x5xf32> -> vector<16x5xf32>
    %cst_23 = arith.constant 0.000000e+00 : f32
    %42 = vector.broadcast %cst_23 : f32 to vector<16x1xf32>
    %cst_24 = arith.constant 0.000000e+00 : f32
    %43 = vector.broadcast %cst_24 : f32 to vector<16x1xf32>
    %cst_25 = arith.constant 0.000000e+00 : f32
    %44 = vector.broadcast %cst_25 : f32 to vector<16x1xf32>
    %45 = arith.maximumf %25, %27 : vector<16x5xf32>
    %46 = arith.maximumf %45, %29 : vector<16x5xf32>
    %47 = arith.subf %25, %46 : vector<16x5xf32>
    %48 = math.exp %47 : vector<16x5xf32>
    %49 = arith.subf %27, %46 : vector<16x5xf32>
    %50 = math.exp %49 : vector<16x5xf32>
    %51 = arith.subf %29, %46 : vector<16x5xf32>
    %52 = math.exp %51 : vector<16x5xf32>
    %53 = arith.addf %48, %50 : vector<16x5xf32>
    %54 = arith.addf %53, %52 : vector<16x5xf32>
    %55 = tpu.reciprocal %54 {approx = true} : vector<16x5xf32> -> vector<16x5xf32>
    %56 = arith.mulf %48, %55 : vector<16x5xf32>
    %cst_26 = arith.constant dense<0.000000e+00> : vector<16xf32>
    %57 = vector.multi_reduction <add>, %56, %cst_26 [1] : vector<16x5xf32> to vector<16xf32>
    %58 = vector.shape_cast %57 : vector<16xf32> to vector<16x1xf32>
    %59 = arith.addf %42, %58 : vector<16x1xf32>
    %60 = arith.mulf %50, %55 : vector<16x5xf32>
    %cst_27 = arith.constant dense<0.000000e+00> : vector<16xf32>
    %61 = vector.multi_reduction <add>, %60, %cst_27 [1] : vector<16x5xf32> to vector<16xf32>
    %62 = vector.shape_cast %61 : vector<16xf32> to vector<16x1xf32>
    %63 = arith.addf %43, %62 : vector<16x1xf32>
    %64 = arith.mulf %52, %55 : vector<16x5xf32>
    %cst_28 = arith.constant dense<0.000000e+00> : vector<16xf32>
    %65 = vector.multi_reduction <add>, %64, %cst_28 [1] : vector<16x5xf32> to vector<16xf32>
    %66 = vector.shape_cast %65 : vector<16xf32> to vector<16x1xf32>
    %67 = arith.addf %44, %66 : vector<16x1xf32>
    %68 = arith.maximumf %31, %33 : vector<16x5xf32>
    %69 = arith.maximumf %68, %35 : vector<16x5xf32>
    %70 = arith.subf %31, %69 : vector<16x5xf32>
    %71 = math.exp %70 : vector<16x5xf32>
    %72 = arith.subf %33, %69 : vector<16x5xf32>
    %73 = math.exp %72 : vector<16x5xf32>
    %74 = arith.subf %35, %69 : vector<16x5xf32>
    %75 = math.exp %74 : vector<16x5xf32>
    %76 = arith.addf %71, %73 : vector<16x5xf32>
    %77 = arith.addf %76, %75 : vector<16x5xf32>
    %78 = tpu.reciprocal %77 {approx = true} : vector<16x5xf32> -> vector<16x5xf32>
    %79 = arith.mulf %71, %78 : vector<16x5xf32>
    %cst_29 = arith.constant dense<0.000000e+00> : vector<16xf32>
    %80 = vector.multi_reduction <add>, %79, %cst_29 [1] : vector<16x5xf32> to vector<16xf32>
    %81 = vector.shape_cast %80 : vector<16xf32> to vector<16x1xf32>
    %82 = arith.addf %59, %81 : vector<16x1xf32>
    %83 = arith.mulf %73, %78 : vector<16x5xf32>
    %cst_30 = arith.constant dense<0.000000e+00> : vector<16xf32>
    %84 = vector.multi_reduction <add>, %83, %cst_30 [1] : vector<16x5xf32> to vector<16xf32>
    %85 = vector.shape_cast %84 : vector<16xf32> to vector<16x1xf32>
    %86 = arith.addf %63, %85 : vector<16x1xf32>
    %87 = arith.mulf %75, %78 : vector<16x5xf32>
    %cst_31 = arith.constant dense<0.000000e+00> : vector<16xf32>
    %88 = vector.multi_reduction <add>, %87, %cst_31 [1] : vector<16x5xf32> to vector<16xf32>
    %89 = vector.shape_cast %88 : vector<16xf32> to vector<16x1xf32>
    %90 = arith.addf %67, %89 : vector<16x1xf32>
    %91 = arith.maximumf %37, %39 : vector<16x5xf32>
    %92 = arith.maximumf %91, %41 : vector<16x5xf32>
    %93 = arith.subf %37, %92 : vector<16x5xf32>
    %94 = math.exp %93 : vector<16x5xf32>
    %95 = arith.subf %39, %92 : vector<16x5xf32>
    %96 = math.exp %95 : vector<16x5xf32>
    %97 = arith.subf %41, %92 : vector<16x5xf32>
    %98 = math.exp %97 : vector<16x5xf32>
    %99 = arith.addf %94, %96 : vector<16x5xf32>
    %100 = arith.addf %99, %98 : vector<16x5xf32>
    %101 = tpu.reciprocal %100 {approx = true} : vector<16x5xf32> -> vector<16x5xf32>
    %102 = arith.mulf %94, %101 : vector<16x5xf32>
    %cst_32 = arith.constant dense<0.000000e+00> : vector<16xf32>
    %103 = vector.multi_reduction <add>, %102, %cst_32 [1] : vector<16x5xf32> to vector<16xf32>
    %104 = vector.shape_cast %103 : vector<16xf32> to vector<16x1xf32>
    %105 = arith.addf %82, %104 : vector<16x1xf32>
    %106 = arith.mulf %96, %101 : vector<16x5xf32>
    %cst_33 = arith.constant dense<0.000000e+00> : vector<16xf32>
    %107 = vector.multi_reduction <add>, %106, %cst_33 [1] : vector<16x5xf32> to vector<16xf32>
    %108 = vector.shape_cast %107 : vector<16xf32> to vector<16x1xf32>
    %109 = arith.addf %86, %108 : vector<16x1xf32>
    %110 = arith.mulf %98, %101 : vector<16x5xf32>
    %cst_34 = arith.constant dense<0.000000e+00> : vector<16xf32>
    %111 = vector.multi_reduction <add>, %110, %cst_34 [1] : vector<16x5xf32> to vector<16xf32>
    %112 = vector.shape_cast %111 : vector<16xf32> to vector<16x1xf32>
    %113 = arith.addf %90, %112 : vector<16x1xf32>
    %114 = tpu.iota {dimensions = array<i32: 1>} : vector<16x3xi32>
    %cst_35 = arith.constant 0.000000e+00 : f32
    %115 = vector.broadcast %cst_35 : f32 to vector<16x3xf32>
    %c0_i32 = arith.constant 0 : i32
    %116 = vector.broadcast %c0_i32 : i32 to vector<16x3xi32>
    %117 = arith.cmpi eq, %114, %116 : vector<16x3xi32>
    %118 = vector.shape_cast %105 : vector<16x1xf32> to vector<16x1xf32>
    %119 = vector.broadcast %118 : vector<16x1xf32> to vector<16x3xf32>
    %120 = arith.select %117, %119, %115 : vector<16x3xi1>, vector<16x3xf32>
    %c1_i32 = arith.constant 1 : i32
    %121 = vector.broadcast %c1_i32 : i32 to vector<16x3xi32>
    %122 = arith.cmpi eq, %114, %121 : vector<16x3xi32>
    %123 = vector.shape_cast %109 : vector<16x1xf32> to vector<16x1xf32>
    %124 = vector.broadcast %123 : vector<16x1xf32> to vector<16x3xf32>
    %125 = arith.select %122, %124, %120 : vector<16x3xi1>, vector<16x3xf32>
    %c2_i32 = arith.constant 2 : i32
    %126 = vector.broadcast %c2_i32 : i32 to vector<16x3xi32>
    %127 = arith.cmpi eq, %114, %126 : vector<16x3xi32>
    %128 = vector.shape_cast %113 : vector<16x1xf32> to vector<16x1xf32>
    %129 = vector.broadcast %128 : vector<16x1xf32> to vector<16x3xf32>
    %130 = arith.select %127, %129, %125 : vector<16x3xi1>, vector<16x3xf32>
    %cst_36 = arith.constant 2.000000e-01 : f32
    %131 = vector.broadcast %cst_36 : f32 to vector<16x3xf32>
    %132 = arith.mulf %130, %131 : vector<16x3xf32>
    %cst_37 = arith.constant dense<0xFF800000> : vector<16xf32>
    %133 = vector.multi_reduction <maximumf>, %132, %cst_37 [1] : vector<16x3xf32> to vector<16xf32>
    %134 = vector.shape_cast %133 : vector<16xf32> to vector<16x1xf32>
    %135 = vector.broadcast %134 : vector<16x1xf32> to vector<16x3xf32>
    %136 = arith.subf %132, %135 : vector<16x3xf32>
    %137 = math.exp %136 : vector<16x3xf32>
    %cst_38 = arith.constant dense<0.000000e+00> : vector<16xf32>
    %138 = vector.multi_reduction <add>, %137, %cst_38 [1] : vector<16x3xf32> to vector<16xf32>
    %139 = vector.shape_cast %138 : vector<16xf32> to vector<16x1xf32>
    %140 = vector.broadcast %139 : vector<16x1xf32> to vector<16x3xf32>
    %141 = arith.divf %137, %140 : vector<16x3xf32>
    %c0_39 = arith.constant 0 : index
    %c0_40 = arith.constant 0 : index
    %142 = vector.load %arg5[%c0_39, %c0_40] : memref<16x3xf32, #tpu.memory_space<vmem>>, vector<16x3xf32>
    tpu.vector_store %arg5[%c0_39, %c0_40], %141 {strides = array<i32>} : memref<16x3xf32, #tpu.memory_space<vmem>>, vector<16x3xf32>,
    return
  }
  func.func @transform_0(%arg0: i32) -> (i32, i32, i32) {
    %c0_i32 = arith.constant 0 : i32
    %c0_i32_0 = arith.constant 0 : i32
    %c0_i32_1 = arith.constant 0 : i32
    return %c0_i32, %arg0, %c0_i32_0 : i32, i32, i32
  }
  func.func @transform_1(%arg0: i32) -> (i32, i32) {
    %c0_i32 = arith.constant 0 : i32
    %c0_i32_0 = arith.constant 0 : i32
    %c0_i32_1 = arith.constant 0 : i32
    return %c0_i32, %c0_i32_0 : i32, i32
  }
  func.func @transform_2(%arg0: i32) -> (i32, i32) {
    %c0_i32 = arith.constant 0 : i32
    %c0_i32_0 = arith.constant 0 : i32
    %c0_i32_1 = arith.constant 0 : i32
    return %c0_i32, %c0_i32_0 : i32, i32
  }
  func.func @transform_3(%arg0: i32) -> (i32, i32) {
    %c0_i32 = arith.constant 0 : i32
    %c0_i32_0 = arith.constant 0 : i32
    %c0_i32_1 = arith.constant 0 : i32
    return %c0_i32, %c0_i32_0 : i32, i32
  }
  func.func @transform_4(%arg0: i32) -> (i32, i32) {
    %c0_i32 = arith.constant 0 : i32
    %c0_i32_0 = arith.constant 0 : i32
    return %arg0, %c0_i32 : i32, i32
  }
}

</mosaic_0001>

<bundles_post_ra>
// kernel: tpu_custom_call.1
= control target key start
LH: loop header
LB: loop body
LE: loop exit
PB: predicated region body
PF: predicated region fallthrough
CT: control target
= control target key end

     0   :  { %vm58_vm0 = vcmask 1043456   ;;  %vm54_vm1 = vcmask 326656   ;;  %s780_s28 = smov 88   ;;  %vm459_vm2 = vcmask 39936   ;;  %vm617_vm6 = vcmask 23552   ;;  %s980_s1 = inlined_call_operand.vmem [shape: bf16[40,80], index: 1, kind: input, shape index: {}]   ;;  %s981_s2 = inlined_call_operand.vmem [shape: f32[1,80], index: 2, kind: input, shape index: {}]   ;;  %s982_s0 = inlined_call_operand.vmem [shape: bf16[3,16,40], index: 0, kind: input, shape index: {}]   ;;  %s983_s3 = inlined_call_operand.vmem [shape: f32[40,5], index: 3, kind: input, shape index: {}]   ;;  %s984_s4 = inlined_call_operand.vmem [shape: f32[16,3], index: 4, kind: output, shape index: {}]  }
   0x1   :  { %v22_v0 = vld [vmem:[%s980_s1 + $0x10] sm:$0xf]  ;;  %v718_v4 = vld [vmem:[%s980_s1 + $0x8] sm:$0xff]  ;;  %v717_v5 = vld [vmem:[%s980_s1] sm:$0xff] }
   0x2   :  { %v48_v1 = vunpack.c.l.b16 %v22_v0  ;;  %v719_v6 = vld [vmem:[%s982_s0] sm:$0xff]  ;;  %v720_v7 = vld [vmem:[%s982_s0 + $0x8] sm:$0xff]  ;;  %v721_v8 = vld [vmem:[%s982_s0 + $0x10] sm:$0xff] }
   0x3   :  { %v723_v9 = vld [vmem:[%s981_s2] ss:$0 sm:$0xff]  ;;  %v27_v23 = vld [vmem:[%s983_s3 + $0x18] sm:$0xff]  ;;  %v26_v24 = vld [vmem:[%s983_s3 + $0x10] sm:$0xff] }
   0x4   :  { %v51_v2 = vpack.c.b16 %v48_v1, %v48_v1  ;;  %v28_v22 = vld [vmem:[%s983_s3 + $0x20] sm:$0xff]  ;;  %v25_v25 = vld [vmem:[%s983_s3 + $0x8] sm:$0xff] }
   0x5   :  { %153 = vmatpush.msra.mxu3 %v28_v22  ;;  %v24_v26 = vld [vmem:[%s983_s3] sm:$0xff] }
   0x6   :  { %v60_v3 = vsel %vm58_vm0, %v51_v2, 0 }
   0x7   :  { %67 = vmatpush.bf16.msra.mxu0 %v60_v3  ;;  %92 = vmatpush.bf16.msra.mxu1 %v60_v3 }
   0x8   :  { %117 = vmatpush.bf16.msra.mxu2 %v60_v3  ;;  %154 = vmatpush.msra.mxu3 %v27_v23 }
   0xa   :  { %155 = vmatpush.msra.mxu3 %v26_v24 }
   0xb   :  { %68 = vmatpush.bf16.msra.mxu0 %v718_v4  ;;  %93 = vmatpush.bf16.msra.mxu1 %v718_v4 }
   0xc   :  { %118 = vmatpush.bf16.msra.mxu2 %v718_v4  ;;  %156 = vmatpush.msra.mxu3 %v25_v25 }
   0xe   :  { %157 = vmatpush.msra.mxu3 %v24_v26 }
   0xf   :  { %69 = vmatpush.bf16.msra.mxu0 %v717_v5  ;;  %94 = vmatpush.bf16.msra.mxu1 %v717_v5 }
  0x10   :  { %119 = vmatpush.bf16.msra.mxu2 %v717_v5  ;;  %192 = vmatpush.msrb.mxu3 %v28_v22 }
  0x12   :  { %684 = vmatmul.msk.bf16.vlgmr.msra.gmra.mxu0 %vm54_vm1, %v719_v6  ;;  %691 = vmatmul.msk.bf16.vlgmr.msra.gmra.mxu1 %vm54_vm1, %v720_v7 }
  0x13   :  { %698 = vmatmul.msk.bf16.vlgmr.msra.gmra.mxu2 %vm54_vm1, %v721_v8  ;;  %262 = vmatpush.msrb.mxu1 %v28_v22 }
  0x14   :  { %293 = vmatpush.msrb.mxu2 %v28_v22  ;;  %231 = vmatpush.msrb.mxu0 %v28_v22 }
  0x15   :  { %263 = vmatpush.msrb.mxu1 %v27_v23  ;;  %193 = vmatpush.msrb.mxu3 %v27_v23 }
  0x16   :  { %294 = vmatpush.msrb.mxu2 %v27_v23  ;;  %232 = vmatpush.msrb.mxu0 %v27_v23 }
  0x17   :  { %264 = vmatpush.msrb.mxu1 %v26_v24  ;;  %194 = vmatpush.msrb.mxu3 %v26_v24 }
  0x18   :  { %295 = vmatpush.msrb.mxu2 %v26_v24  ;;  %233 = vmatpush.msrb.mxu0 %v26_v24 }
  0x19   :  { %265 = vmatpush.msrb.mxu1 %v25_v25  ;;  %195 = vmatpush.msrb.mxu3 %v25_v25 }
  0x1a   :  { %296 = vmatpush.msrb.mxu2 %v25_v25  ;;  %234 = vmatpush.msrb.mxu0 %v25_v25 }
  0x1b   :  { %266 = vmatpush.msrb.mxu1 %v24_v26  ;;  %196 = vmatpush.msrb.mxu3 %v24_v26 }
  0x1c   :  { %297 = vmatpush.msrb.mxu2 %v24_v26  ;;  %235 = vmatpush.msrb.mxu0 %v24_v26 }
  0x1d   :  { %386 = vmatpush.msra.mxu1 %v28_v22 }
  0x1e   :  { %417 = vmatpush.msra.mxu2 %v28_v22  ;;  %355 = vmatpush.msra.mxu0 %v28_v22 }
  0x1f   :  { %387 = vmatpush.msra.mxu1 %v27_v23 }
  0x20   :  { %418 = vmatpush.msra.mxu2 %v27_v23  ;;  %356 = vmatpush.msra.mxu0 %v27_v23 }
  0x21   :  { %388 = vmatpush.msra.mxu1 %v26_v24 }
  0x22   :  { %419 = vmatpush.msra.mxu2 %v26_v24  ;;  %357 = vmatpush.msra.mxu0 %v26_v24 }
  0x23   :  { %389 = vmatpush.msra.mxu1 %v25_v25 }
  0x24   :  { %420 = vmatpush.msra.mxu2 %v25_v25  ;;  %358 = vmatpush.msra.mxu0 %v25_v25 }
  0x25   :  { %390 = vmatpush.msra.mxu1 %v24_v26 }
  0x26   :  { %421 = vmatpush.msra.mxu2 %v24_v26  ;;  %359 = vmatpush.msra.mxu0 %v24_v26 }
  0x8f   :  { %v71_v10 = vpop.f32.mrf.mxu0  ;;  %v96_v11 = vpop.f32.mrf.mxu1 }
  0x90   :  { %v830_v12 = vadd.f32 %v723_v9, %v71_v10  ;;  %v832_v13 = vadd.f32 %v723_v9, %v96_v11 }
  0x92   :  { %167 = vrot.lane.b32.xlu1 %v832_v13, %s780_s28  ;;  %128 = vrot.lane.b32.xlu0 %v830_v12, %s780_s28 }
  0x96   :  { %v121_v14 = vpop.f32.mrf.mxu2 }
  0x97   :  { %v836_v15 = vadd.f32 %v723_v9, %v121_v14  ;;  %v73_v16 = vpop.f32.mrf.mxu0  ;;  %v98_v17 = vpop.f32.mrf.mxu1 }
  0x98   :  { %v838_v18 = vadd.f32 %v723_v9, %v73_v16  ;;  %v840_v19 = vadd.f32 %v723_v9, %v98_v17 }
  0x9a   :  { %169 = vrot.lane.b32.xlu2 %v840_v19, %s780_s28  ;;  %206 = vrot.lane.b32.xlu1 %v836_v15, %s780_s28 }
  0x9b   :  { %130 = vrot.lane.b32.xlu0 %v838_v18, %s780_s28 }
  0x9e   :  { %v123_v20 = vpop.f32.mrf.mxu2 }
  0x9f   :  { %v845_v21 = vadd.f32 %v723_v9, %v123_v20 }
  0xa2   :  { %208 = vrot.lane.b32.xlu2 %v845_v21, %s780_s28 }
  0xf4   :  { %v170_v32 = vpop.permute.xlu2 %169 }
  0xf5   :  { %v275_v34 = vmul.f32 %v170_v32, %v840_v19  ;;  %v174_v46 = vmul.f32 %v170_v32, %v838_v18  ;;  %v368_v47 = vmul.f32 %v170_v32, %v845_v21 }
  0xfc   :  { %v209_v39 = vpop.permute.xlu2 %208 }
  0xfd   :  { %v213_v40 = vmul.f32 %v209_v39, %v838_v18  ;;  %v399_v44 = vmul.f32 %v209_v39, %v845_v21  ;;  %v306_v50 = vmul.f32 %v209_v39, %v840_v19 }
 0x104   :  { %v168_v27 = vpop.permute.xlu1 %167  ;;  %v129_v28 = vpop.permute.xlu0 %128 }
 0x105   :  { %v274_v29 = vmul.f32 %v168_v27, %v832_v13  ;;  %v134_v30 = vmul.f32 %v129_v28, %v830_v12  ;;  %v243_v31 = vmul.f32 %v129_v28, %v832_v13  ;;  %v173_v42 = vmul.f32 %v168_v27, %v830_v12 }
 0x106   :  { %v367_v43 = vmul.f32 %v168_v27, %v836_v15  ;;  %v336_v45 = vmul.f32 %v129_v28, %v836_v15 }
 0x107   :  { %699 = vmatmul.msk.f32.vlgmr.msra.gmra.mxu3 %vm54_vm1, %v134_v30  ;;  %707 = vmatmul.msk.f32.vlgmr.msrb.gmra.mxu2 %vm54_vm1, %v274_v29 }
 0x108   :  { %705 = vmatmul.msk.f32.vlgmr.msrb.gmra.mxu1 %vm54_vm1, %v243_v31  ;;  %324 = vmatpush.msra.mxu3 %v28_v22 }
 0x10a   :  { %325 = vmatpush.msra.mxu3 %v27_v23 }
 0x10c   :  { %v207_v33 = vpop.permute.xlu1 %206  ;;  %326 = vmatpush.msra.mxu3 %v26_v24 }
 0x10d   :  { %v212_v35 = vmul.f32 %v207_v33, %v830_v12  ;;  %v131_v36 = vpop.permute.xlu0 %130  ;;  %v398_v41 = vmul.f32 %v207_v33, %v836_v15  ;;  %v305_v49 = vmul.f32 %v207_v33, %v832_v13 }
 0x10e   :  { %v135_v37 = vmul.f32 %v131_v36, %v838_v18  ;;  %v244_v38 = vmul.f32 %v131_v36, %v840_v19  ;;  %327 = vmatpush.msra.mxu3 %v25_v25  ;;  %v337_v48 = vmul.f32 %v131_v36, %v845_v21 }
 0x10f   :  { %703 = vmatmul.msk.f32.vlgmr.msrb.gmra.mxu0 %vm54_vm1, %v212_v35  ;;  %708 = vmatmul.msk.f32.gmra.mxu2 %vm54_vm1, %v275_v34 }
 0x110   :  { %700 = vmatmul.msk.f32.gmra.mxu3 %vm54_vm1, %v135_v37  ;;  %706 = vmatmul.msk.f32.gmra.mxu1 %vm54_vm1, %v244_v38 }
 0x111   :  { %328 = vmatpush.msra.mxu3 %v24_v26 }
 0x117   :  { %704 = vmatmul.msk.f32.gmra.mxu0 %vm54_vm1, %v213_v40  ;;  %715 = vmatmul.msk.f32.vlgmr.msra.gmra.mxu2 %vm54_vm1, %v398_v41 }
 0x118   :  { %701 = vmatmul.msk.f32.vlgmr.msrb.gmra.mxu3 %vm54_vm1, %v173_v42  ;;  %713 = vmatmul.msk.f32.vlgmr.msra.gmra.mxu1 %vm54_vm1, %v367_v43 }
 0x11f   :  { %711 = vmatmul.msk.f32.vlgmr.msra.gmra.mxu0 %vm54_vm1, %v336_v45  ;;  %716 = vmatmul.msk.f32.gmra.mxu2 %vm54_vm1, %v399_v44 }
 0x120   :  { %702 = vmatmul.msk.f32.gmra.mxu3 %vm54_vm1, %v174_v46  ;;  %714 = vmatmul.msk.f32.gmra.mxu1 %vm54_vm1, %v368_v47 }
 0x127   :  { %712 = vmatmul.msk.f32.gmra.mxu0 %vm54_vm1, %v337_v48 }
 0x128   :  { %709 = vmatmul.msk.f32.vlgmr.msra.gmra.mxu3 %vm54_vm1, %v305_v49 }
 0x130   :  { %710 = vmatmul.msk.f32.gmra.mxu3 %vm54_vm1, %v306_v50 }
 0x185   :  { %v899_v51 = vpop.f32.mrf.mxu1 }
 0x18a   :  { %v159_v52 = vpop.f32.mrf.mxu3  ;;  %v901_v53 = vpop.f32.mrf.mxu2 }
 0x18b   :  { %v488_v26 = vmax.f32 %v899_v51, %v901_v53 }
 0x18c   :  { %v237_v54 = vpop.f32.mrf.mxu0 }
 0x18d   :  { %v903_v55 = vpop.f32.mrf.mxu1 }
 0x192   :  { %v905_v56 = vpop.f32.mrf.mxu2 }
 0x193   :  { %v162_v57 = vpop.f32.mrf.mxu3 }
 0x194   :  { %v240_v58 = vpop.f32.mrf.mxu0 }
 0x195   :  { %v392_v59 = vpop.f32.mrf.mxu1 }
 0x19a   :  { %v423_v62 = vpop.f32.mrf.mxu2 }
 0x19b   :  { %v198_v60 = vpop.f32.mrf.mxu3 }
 0x19c   :  { %v429_v61 = vmax.f32 %v159_v52, %v198_v60  ;;  %v361_v63 = vpop.f32.mrf.mxu0 }
 0x19d   :  { %v546_v0 = vmax.f32 %v361_v63, %v392_v59  ;;  %v395_v15 = vpop.f32.mrf.mxu1 }
 0x19e   :  { %v431_v1 = vmax.f32 %v429_v61, %v237_v54 }
 0x19f   :  { %v548_v2 = vmax.f32 %v546_v0, %v423_v62 }
 0x1a0   :  { %v433_v3 = vsub.f32 %v159_v52, %v431_v1  ;;  %v439_v4 = vsub.f32 %v198_v60, %v431_v1  ;;  %v445_v5 = vsub.f32 %v237_v54, %v431_v1 }
 0x1a1   :  { %v550_v6 = vsub.f32 %v361_v63, %v548_v2  ;;  %v556_v7 = vsub.f32 %v392_v59, %v548_v2  ;;  %v562_v11 = vsub.f32 %v423_v62, %v548_v2 }
 0x1a2   :  { %v435_v8 = vmul.f32 1.442695, %v433_v3  ;;  %v441_v9 = vmul.f32 1.442695, %v439_v4  ;;  %v447_v10 = vmul.f32 1.442695, %v445_v5  ;;  %v426_v21 = vpop.f32.mrf.mxu2 }
 0x1a3   :  { %v552_v12 = vmul.f32 1.442695, %v550_v6  ;;  %v201_v13 = vpop.f32.mrf.mxu3  ;;  %v558_v14 = vmul.f32 1.442695, %v556_v7  ;;  %v564_v19 = vmul.f32 1.442695, %v562_v11 }
 0x1a4   :  { %724 = vpow2.f32 %v435_v8  ;;  %v430_v16 = vmax.f32 %v162_v57, %v201_v13  ;;  %v364_v17 = vpop.f32.mrf.mxu0 }
 0x1a5   :  { %726 = vpow2.f32 %v441_v9  ;;  %v547_v18 = vmax.f32 %v364_v17, %v395_v15 }
 0x1a6   :  { %728 = vpow2.f32 %v447_v10  ;;  %v432_v20 = vmax.f32 %v430_v16, %v240_v58 }
 0x1a7   :  { %730 = vpow2.f32 %v552_v12  ;;  %v549_v22 = vmax.f32 %v547_v18, %v426_v21 }
 0x1a8   :  { %732 = vpow2.f32 %v558_v14  ;;  %v434_v23 = vsub.f32 %v162_v57, %v432_v20  ;;  %v440_v24 = vsub.f32 %v201_v13, %v432_v20  ;;  %v446_v25 = vsub.f32 %v240_v58, %v432_v20 }
 0x1a9   :  { %v551_v27 = vsub.f32 %v364_v17, %v549_v22  ;;  %v557_v28 = vsub.f32 %v395_v15, %v549_v22  ;;  %v563_v29 = vsub.f32 %v426_v21, %v549_v22  ;;  %734 = vpow2.f32 %v564_v19 }
 0x1aa   :  { %v725_v30 = vpop.eup %724  ;;  %v437_v31 = vmul.f32 1.442695, %v434_v23  ;;  %v443_v32 = vmul.f32 1.442695, %v440_v24  ;;  %v449_v33 = vmul.f32 1.442695, %v446_v25  ;;  %v489_v58 = vmax.f32 %v903_v55, %v905_v56 }
 0x1ab   :  { %v909_v34 = vpop.eup %726  ;;  %v554_v35 = vmul.f32 1.442695, %v551_v27  ;;  %v330_v36 = vpop.f32.mrf.mxu3  ;;  %v560_v41 = vmul.f32 1.442695, %v557_v28  ;;  %v566_v42 = vmul.f32 1.442695, %v563_v29 }
 0x1ac   :  { %v729_v37 = vpop.eup %728  ;;  %v451_v38 = vadd.f32 %v909_v34, %v725_v30  ;;  %736 = vpow2.f32 %v437_v31  ;;  %v490_v39 = vmax.f32 %v488_v26, %v330_v36 }
 0x1ad   :  { %v731_v40 = vpop.eup %730  ;;  %738 = vpow2.f32 %v443_v32 }
 0x1ae   :  { %v733_v43 = vpop.eup %732  ;;  %v453_v44 = vadd.f32 %v729_v37, %v451_v38  ;;  %740 = vpow2.f32 %v449_v33  ;;  %v492_v45 = vsub.f32 %v899_v51, %v490_v39  ;;  %v498_v46 = vsub.f32 %v901_v53, %v490_v39 }
 0x1af   :  { %v568_v47 = vadd.f32 %v733_v43, %v731_v40  ;;  %742 = vpow2.f32 %v554_v35  ;;  %v504_v48 = vsub.f32 %v330_v36, %v490_v39  ;;  %v914_v49 = vpop.eup %734 }
 0x1b0   :  { %744 = vrcp.f32 %v453_v44  ;;  %v494_v50 = vmul.f32 1.442695, %v492_v45  ;;  %v500_v54 = vmul.f32 1.442695, %v498_v46 }
 0x1b1   :  { %v570_v52 = vadd.f32 %v914_v49, %v568_v47  ;;  %746 = vpow2.f32 %v560_v41  ;;  %v506_v53 = vmul.f32 1.442695, %v504_v48 }
 0x1b2   :  { %v917_v57 = vpop.eup %736  ;;  %748 = vpow2.f32 %v566_v42 }
 0x1b3   :  { %v921_v51 = vpop.eup %738  ;;  %750 = vrcp.f32 %v570_v52  ;;  %v333_v59 = vpop.f32.mrf.mxu3 }
 0x1b4   :  { %v741_v60 = vpop.eup %740  ;;  %v452_v61 = vadd.f32 %v921_v51, %v917_v57  ;;  %752 = vpow2.f32 %v494_v50  ;;  %v491_v62 = vmax.f32 %v489_v58, %v333_v59 }
 0x1b5   :  { %v743_v63 = vpop.eup %742  ;;  %754 = vpow2.f32 %v500_v54 }
 0x1b6   :  { %v745_v0 = vpop.eup %744  ;;  %v454_v1 = vadd.f32 %v741_v60, %v452_v61  ;;  %v493_v2 = vsub.f32 %v903_v55, %v491_v62  ;;  %v499_v3 = vsub.f32 %v905_v56, %v491_v62  ;;  %756 = vpow2.f32 %v506_v53 }
 0x1b7   :  { %v927_v4 = vpop.eup %746  ;;  %v478_v5 = vmul.f32 %v745_v0, %v729_v37  ;;  %v457_v6 = vmul.f32 %v745_v0, %v725_v30  ;;  %v505_v12 = vsub.f32 %v333_v59, %v491_v62  ;;  %v468_v22 = vmul.f32 %v745_v0, %v909_v34 }
 0x1b8   :  { %v929_v7 = vpop.eup %748  ;;  %758 = vrcp.f32 %v454_v1  ;;  %v569_v8 = vadd.f32 %v927_v4, %v743_v63  ;;  %v496_v9 = vmul.f32 1.442695, %v493_v2  ;;  %v502_v10 = vmul.f32 1.442695, %v499_v3 }
 0x1b9   :  { %v932_v11 = vpop.eup %750  ;;  %v480_v55 = vsel %vm459_vm2, %v478_v5, 0.0  ;;  %v460_v56 = vsel %vm459_vm2, %v457_v6, 0.0  ;;  %v508_v20 = vmul.f32 1.442695, %v505_v12  ;;  %v470_v29 = vsel %vm459_vm2, %v468_v22, 0.0 }
 0x1ba   :  { %v753_v13 = vpop.eup %752  ;;  %v571_v14 = vadd.f32 %v929_v7, %v569_v8  ;;  %760 = vpow2.f32 %v496_v9  ;;  %481 = vadd.xlane.f32.xlu1 %v480_v55  ;;  %461 = vadd.xlane.f32.xlu0 %v460_v56  ;;  %v574_v15 = vmul.f32 %v932_v11, %v731_v40  ;;  %v584_v21 = vmul.f32 %v932_v11, %v733_v43 }
 0x1bb   :  { %v755_v16 = vpop.eup %754  ;;  %762 = vpow2.f32 %v502_v10  ;;  %v594_v59 = vmul.f32 %v932_v11, %v914_v49  ;;  %v604_v11 = vlaneseq }
 0x1bc   :  { %764 = vrcp.f32 %v571_v14  ;;  %v510_v17 = vadd.f32 %v755_v16, %v753_v13  ;;  %v576_v18 = vsel %vm459_vm2, %v574_v15, 0.0  ;;  %v757_v19 = vpop.eup %756  ;;  %v586_v28 = vsel %vm459_vm2, %v584_v21, 0.0 }
 0x1bd   :  { %577 = vadd.xlane.f32.xlu2 %v576_v18  ;;  %v596_v62 = vsel %vm459_vm2, %v594_v59, 0.0 }
 0x1be   :  { %v759_v23 = vpop.eup %758  ;;  %v512_v24 = vadd.f32 %v757_v19, %v510_v17 }
 0x1bf   :  { %v479_v26 = vmul.f32 %v759_v23, %v741_v60  ;;  %v458_v34 = vmul.f32 %v759_v23, %v917_v57  ;;  %v469_v42 = vmul.f32 %v759_v23, %v921_v51 }
 0x1c0   :  { %v761_v25 = vpop.eup %760  ;;  %766 = vrcp.f32 %v512_v24 }
 0x1c1   :  { %v763_v27 = vpop.eup %762  ;;  %768 = vpow2.f32 %v508_v20  ;;  %v483_v32 = vsel %vm459_vm2, %v479_v26, 0.0  ;;  %v463_v40 = vsel %vm459_vm2, %v458_v34, 0.0  ;;  %v473_v45 = vsel %vm459_vm2, %v469_v42, 0.0 }
 0x1c2   :  { %v765_v30 = vpop.eup %764  ;;  %587 = vadd.xlane.f32.xlu1 %v586_v28  ;;  %471 = vadd.xlane.f32.xlu0 %v470_v29  ;;  %v511_v31 = vadd.f32 %v763_v27, %v761_v25 }
 0x1c3   :  { %v575_v33 = vmul.f32 %v765_v30, %v743_v63  ;;  %v595_v53 = vmul.f32 %v765_v30, %v929_v7  ;;  %v585_v60 = vmul.f32 %v765_v30, %v927_v4 }
 0x1c5   :  { %484 = vadd.xlane.f32.xlu2 %v483_v32  ;;  %v579_v39 = vsel %vm459_vm2, %v575_v33, 0.0  ;;  %v599_v61 = vsel %vm459_vm2, %v595_v53, 0.0  ;;  %v589_v63 = vsel %vm459_vm2, %v585_v60, 0.0 }
 0x1c6   :  { %v767_v35 = vpop.eup %766 }
 0x1c7   :  { %v769_v36 = vpop.eup %768  ;;  %v516_v38 = vmul.f32 %v767_v35, %v753_v13  ;;  %v536_v43 = vmul.f32 %v767_v35, %v757_v19  ;;  %v526_v44 = vmul.f32 %v767_v35, %v755_v16  ;;  %v605_v13 = vand.u32 127, %v604_v11 }
 0x1c8   :  { %v513_v37 = vadd.f32 %v769_v36, %v511_v31 }
 0x1c9   :  { %v518_v41 = vsel %vm459_vm2, %v516_v38, 0.0  ;;  %v538_v46 = vsel %vm459_vm2, %v536_v43, 0.0  ;;  %v528_v48 = vsel %vm459_vm2, %v526_v44, 0.0  ;;  %vm606_vm3 = vcmp.eq.s32.totalorder %v605_v13, 0 }
 0x1ca   :  { %580 = vadd.xlane.f32.xlu0 %v579_v39  ;;  %464 = vadd.xlane.f32.xlu1 %v463_v40  ;;  %770 = vrcp.f32 %v513_v37  ;;  %vm609_vm4 = vcmp.eq.s32.totalorder %v605_v13, 1  ;;  %vm612_vm5 = vcmp.eq.s32.totalorder %v605_v13, 2 }
 0x1cd   :  { %519 = vadd.xlane.f32.xlu2 %v518_v41 }
 0x1d0   :  { %v771_v47 = vpop.eup %770 }
 0x1d1   :  { %v537_v50 = vmul.f32 %v771_v47, %v769_v36  ;;  %v527_v52 = vmul.f32 %v771_v47, %v763_v27  ;;  %v517_v54 = vmul.f32 %v771_v47, %v761_v25 }
 0x1d2   :  { %474 = vadd.xlane.f32.xlu1 %v473_v45  ;;  %539 = vadd.xlane.f32.xlu0 %v538_v46 }
 0x1d3   :  { %v541_v57 = vsel %vm459_vm2, %v537_v50, 0.0  ;;  %v531_v58 = vsel %vm459_vm2, %v527_v52, 0.0  ;;  %v521_v51 = vsel %vm459_vm2, %v517_v54, 0.0 }
 0x1d5   :  { %529 = vadd.xlane.f32.xlu2 %v528_v48 }
 0x1da   :  { %542 = vadd.xlane.f32.xlu1 %v541_v57  ;;  %532 = vadd.xlane.f32.xlu0 %v531_v58 }
 0x1dd   :  { %522 = vadd.xlane.f32.xlu2 %v521_v51 }
 0x1e2   :  { %600 = vadd.xlane.f32.xlu1 %v599_v61  ;;  %597 = vadd.xlane.f32.xlu0 %v596_v62 }
 0x1e5   :  { %590 = vadd.xlane.f32.xlu2 %v589_v63 }
 0x22d   :  { %v482_v0 = vpop.xlane.xlu1 %481  ;;  %v462_v1 = vpop.xlane.xlu0 %461 }
 0x230   :  { %v578_v2 = vpop.xlane.xlu2 %577 }
 0x235   :  { %v588_v3 = vpop.xlane.xlu1 %587  ;;  %v472_v5 = vpop.xlane.xlu0 %471 }
 0x238   :  { %v485_v6 = vpop.xlane.xlu2 %484 }
 0x23d   :  { %v581_v7 = vpop.xlane.xlu0 %580  ;;  %v465_v8 = vpop.xlane.xlu1 %464 }
 0x240   :  { %v520_v49 = vpop.xlane.xlu2 %519 }
 0x241   :  { %v524_v56 = vadd.f32 %v520_v49, %v462_v1 }
 0x243   :  { %v582_v16 = vadd.f32 %v578_v2, %v524_v56 }
 0x245   :  { %v475_v9 = vpop.xlane.xlu1 %474  ;;  %v540_v4 = vpop.xlane.xlu0 %539  ;;  %v607_v21 = vsel %vm606_vm3, %v582_v16, 0.0 }
 0x246   :  { %v544_v19 = vadd.f32 %v540_v4, %v482_v0 }
 0x248   :  { %v530_v10 = vpop.xlane.xlu2 %529 }
 0x249   :  { %v534_v14 = vadd.f32 %v530_v10, %v472_v5 }
 0x24b   :  { %v592_v18 = vadd.f32 %v588_v3, %v534_v14 }
 0x24d   :  { %v543_v12 = vpop.xlane.xlu1 %542  ;;  %v533_v55 = vpop.xlane.xlu0 %532  ;;  %v610_v26 = vsel %vm609_vm4, %v592_v18, %v607_v21 }
 0x24e   :  { %v535_v24 = vadd.f32 %v533_v55, %v475_v9  ;;  %v545_v27 = vadd.f32 %v543_v12, %v485_v6 }
 0x250   :  { %v523_v15 = vpop.xlane.xlu2 %522 }
 0x251   :  { %v525_v17 = vadd.f32 %v523_v15, %v465_v8 }
 0x253   :  { %v583_v22 = vadd.f32 %v581_v7, %v525_v17 }
 0x255   :  { %v598_v20 = vpop.xlane.xlu0 %597  ;;  %v601_v25 = vpop.xlane.xlu1 %600  ;;  %v608_v32 = vsel %vm606_vm3, %v583_v22, 0.0 }
 0x256   :  { %v602_v23 = vadd.f32 %v598_v20, %v544_v19  ;;  %v603_v33 = vadd.f32 %v601_v25, %v545_v27 }
 0x258   :  { %v591_v28 = vpop.xlane.xlu2 %590  ;;  %v613_v29 = vsel %vm612_vm5, %v602_v23, %v610_v26 }
 0x259   :  { %v593_v30 = vadd.f32 %v591_v28, %v535_v24  ;;  %v615_v31 = vmul.f32 0.2, %v613_v29 }
 0x25b   :  { %v618_v34 = vsel %vm617_vm6, %v615_v31, -inf  ;;  %v611_v35 = vsel %vm609_vm4, %v593_v30, %v608_v32 }
 0x25c   :  { %619 = vmax.xlane.f32.xlu2 %v618_v34  ;;  %v614_v36 = vsel %vm612_vm5, %v603_v33, %v611_v35 }
 0x25d   :  { %v616_v37 = vmul.f32 0.2, %v614_v36 }
 0x25f   :  { %v621_v38 = vsel %vm617_vm6, %v616_v37, -inf }
 0x260   :  { %622 = vmax.xlane.f32.xlu0 %v621_v38 }
 0x2cf   :  { %v620_v39 = vpop.xlane.xlu2 %619 }
 0x2d0   :  { %v624_v40 = vsub.f32 %v615_v31, %v620_v39 }
 0x2d2   :  { %v626_v41 = vmul.f32 1.442695, %v624_v40 }
 0x2d3   :  { %v623_v42 = vpop.xlane.xlu0 %622 }
 0x2d4   :  { %772 = vpow2.f32 %v626_v41  ;;  %v625_v43 = vsub.f32 %v616_v37, %v623_v42 }
 0x2d6   :  { %v628_v44 = vmul.f32 1.442695, %v625_v43 }
 0x2d8   :  { %774 = vpow2.f32 %v628_v44 }
 0x2da   :  { %v773_v45 = vpop.eup %772 }
 0x2db   :  { %v630_v46 = vsel %vm617_vm6, %v773_v45, 0.0 }
 0x2dc   :  { %631 = vadd.xlane.f32.xlu1 %v630_v46 }
 0x2de   :  { %v775_v47 = vpop.eup %774 }
 0x2df   :  { %v633_v48 = vsel %vm617_vm6, %v775_v47, 0.0 }
 0x2e0   :  { %634 = vadd.xlane.f32.xlu2 %v633_v48 }
 0x34f   :  { %v632_v50 = vpop.xlane.xlu1 %631 }
 0x350   :  { %776 = vrcp.f32 %v632_v50  ;;  %v645_v53 = vand.u32 2147483647, %v632_v50  ;;  %v647_v59 = vand.u32 2147483648, %v632_v50  ;;  %vm641_vm8 = vweird.f32 %v632_v50 }
 0x352   :  { %vm646_vm10 = vcmp.eq.f32.partialorder %v645_v53, 8.507059e+37  ;;  %v648_v0 = vor.u32 1.1754944e-38, %v647_v59 }
 0x353   :  { %v635_v52 = vpop.xlane.xlu2 %634 }
 0x354   :  { %778 = vrcp.f32 %v635_v52  ;;  %v662_v1 = vand.u32 2147483648, %v635_v52  ;;  %v660_v5 = vand.u32 2147483647, %v635_v52  ;;  %vm656_vm12 = vweird.f32 %v635_v52 }
 0x356   :  { %v777_v54 = vpop.eup %776  ;;  %v663_v49 = vor.u32 1.1754944e-38, %v662_v1  ;;  %vm661_vm14 = vcmp.eq.f32.partialorder %v660_v5, 8.507059e+37 }
 0x357   :  { %v637_v57 = vmul.f32 %v777_v54, %v632_v50  ;;  %vm642_vm7 = vweird.f32 %v777_v54 }
 0x358   :  { %vm643_vm9 = vmor %vm641_vm8, %vm642_vm7 }
 0x359   :  { %v638_v58 = vsub.f32 1.0, %v637_v57 }
 0x35a   :  { %v779_v51 = vpop.eup %778 }
 0x35b   :  { %v639_v60 = vmul.f32 %v777_v54, %v638_v58  ;;  %v652_v61 = vmul.f32 %v779_v51, %v635_v52  ;;  %vm657_vm11 = vweird.f32 %v779_v51 }
 0x35c   :  { %vm658_vm13 = vmor %vm656_vm12, %vm657_vm11 }
 0x35d   :  { %v640_v62 = vadd.f32 %v777_v54, %v639_v60  ;;  %v653_v63 = vsub.f32 1.0, %v652_v61 }
 0x35f   :  { %v644_v2 = vsel %vm643_vm9, %v777_v54, %v640_v62  ;;  %v654_v3 = vmul.f32 %v779_v51, %v653_v63 }
 0x360   :  { %v649_v6 = vsel %vm646_vm10, %v648_v0, %v644_v2 }
 0x361   :  { %v650_v7 = vmul.f32 %v773_v45, %v649_v6  ;;  %v655_v8 = vadd.f32 %v779_v51, %v654_v3 }
 0x363   :  { %666 = vst.msk [vmem:[%s984_s4] sm:$0xff] %vm617_vm6, %v650_v7  ;;  %v659_v9 = vsel %vm658_vm13, %v779_v51, %v655_v8 }
 0x364   :  { %v664_v4 = vsel %vm661_vm14, %v663_v49, %v659_v9 }
 0x365   :  { %v665_v10 = vmul.f32 %v775_v47, %v664_v4 }
 0x367   :  { %667 = vst.msk [vmem:[%s984_s4 + $0x8] sm:$0xff] %vm617_vm6, %v665_v10 }

</bundles_post_ra>
